<compile_context>
chip_gen: v7x
topology: tpu7x:2x2x1
jax: 0.10.0
libtpu: 0.0.40
codegen_flags: <defaults>
</compile_context>

<pallas_src>
import math

import jax
import jax.numpy as jnp
from jax import lax
from jax.experimental import pallas as pl
from jax.experimental.pallas import tpu as pltpu

# Budgets chosen to be safe on every generation: v7x has 64 MiB physical VMEM
# per TensorCore (the binding case); v5e/v6e have 128 MiB physical.
_TILE_BUDGET_BYTES = 40 * 1024 * 1024   # budget for double-buffered tiles
_VMEM_LIMIT_BYTES = 50 * 1024 * 1024    # explicit Mosaic scoped-VMEM limit
_JNP_FALLBACK_FLOPS = 1 << 21           # below this, custom-call overhead dominates


def _round_up(n, m):
    return ((n + m - 1) // m) * m


def _linear_kernel(x_ref, w_ref, b_ref, o_ref):
    # x_ref: (bm, In), w_ref: (tn, In) torch-layout weight slice, b_ref: (1, tn).
    # y = x @ W^T + b with f32 accumulation on the MXU; no wrapper transpose
    # (contraction is on dim 1 of both operands).
    acc = lax.dot_general(
        x_ref[...], w_ref[...],
        dimension_numbers=(((1,), (1,)), ((), ())),
        preferred_element_type=jnp.float32,
    )
    acc = acc + b_ref[...].astype(jnp.float32)
    o_ref[...] = acc.astype(o_ref.dtype)


def _tile_vmem_bytes(bm, tn, in_features, itemsize):
    """Double-buffered VMEM footprint of all blocks, incl. (8,128) padding."""
    in_l = _round_up(in_features, 128)   # lane dim of x / weight tiles
    tn_l = _round_up(tn, 128)            # lane dim of out / bias tiles
    bm_s = _round_up(bm, 8)
    tn_s = _round_up(tn, 8)
    x_t = bm_s * in_l
    w_t = tn_s * in_l
    b_t = 8 * tn_l
    o_t = bm_s * tn_l
    # Every BlockSpec (inputs AND output, incl. the constant-index weight/bias)
    # is double-buffered by default.
    return 2 * (x_t + w_t + b_t + o_t) * itemsize


def _choose_tiles(n_rows, in_features, out_features, itemsize,
                  block_rows=None, block_cols=None):
    # N (out-feature) tile: keep the full Out resident when its weight slab is
    # small; otherwise tile in MXU-friendly 256-lane chunks.
    if block_cols is not None:
        tn = block_cols
    else:
        w_full = _round_up(out_features, 8) * _round_up(in_features, 128) * itemsize
        tn = out_features if 2 * w_full <= _TILE_BUDGET_BYTES // 4 else 256
    if tn >= out_features:
        tn = out_features
    else:
        tn = max(128, (tn // 128) * 128)   # < Out => must be a multiple of 128

    # Row tile: scale up to the VMEM budget (fixed ~0.35us/grid-step and small
    # DMAs dominate otherwise), but never bigger than needed.
    if block_rows is not None:
        bm = _round_up(block_rows, 8)
    else:
        bm = 4096
        while bm > 128 and _tile_vmem_bytes(bm, tn, in_features, itemsize) > _TILE_BUDGET_BYTES:
            bm //= 2
    bm = min(bm, _round_up(n_rows, 8))
    bm = max(8, _round_up(bm, 8))
    return bm, tn


def meta_linear_forward(x, weight, bias, *, block_rows=None, block_cols=None):
    """MetaLinear.forward: F.linear(x, weight, bias).

    x:      (..., In)
    weight: (Out, In)   -- torch nn.Linear layout, consumed directly (no transpose)
    bias:   (Out,)
    """
    orig_shape = x.shape
    in_features = orig_shape[-1]
    out_features = weight.shape[0]
    x2 = x.reshape(-1, in_features)
    n_rows = x2.shape[0]

    # Launch/DMA-latency bound regime: XLA's fused dot is as fast or faster.
    if 2 * n_rows * in_features * out_features < _JNP_FALLBACK_FLOPS:
        out2 = x2 @ weight.T + bias
        return out2.reshape(*orig_shape[:-1], out_features)

    itemsize = jnp.dtype(x.dtype).itemsize
    bm, tn = _choose_tiles(n_rows, in_features, out_features, itemsize,
                           block_rows=block_rows, block_cols=block_cols)

    b2 = bias.reshape(1, out_features)

    cost = pl.CostEstimate(
        flops=2 * n_rows * in_features * out_features,
        transcendentals=0,
        bytes_accessed=itemsize * (n_rows * in_features
                                   + in_features * out_features
                                   + out_features
                                   + n_rows * out_features),
    )

    # Ragged grid: Pallas masks the partial final row/col tiles, so no
    # wrapper-side pad/slice (which each cost a full extra HBM pass).
    grid = (pl.cdiv(n_rows, bm), pl.cdiv(out_features, tn))

    out2 = pl.pallas_call(
        _linear_kernel,
        out_shape=jax.ShapeDtypeStruct((n_rows, out_features), x.dtype),
        grid=grid,
        in_specs=[
            pl.BlockSpec((bm, in_features), lambda i, j: (i, 0)),
            pl.BlockSpec((tn, in_features), lambda i, j: (j, 0)),
            pl.BlockSpec((1, tn), lambda i, j: (0, j)),
        ],
        out_specs=pl.BlockSpec((bm, tn), lambda i, j: (i, j)),
        compiler_params=pltpu.CompilerParams(
            dimension_semantics=("parallel", "parallel"),
            vmem_limit_bytes=_VMEM_LIMIT_BYTES,
        ),
        cost_estimate=cost,
    )(x2, weight, b2)
    # NOTE: for very large In a K grid axis ("arbitrary", last) with an f32
    # VMEM accumulator + pl.when init/finalize would bound the x/weight tiles
    # further; In stays un-tiled here since typical MetaLinear hidden sizes fit.

    return out2.reshape(*orig_shape[:-1], out_features)


def _init_meta_linear(key, in_features, out_features, dtype=jnp.float32):
    """Deterministic init mimicking nn.Linear: U(-1/sqrt(in), 1/sqrt(in))."""
    kw, kb = jax.random.split(key)
    bound = 1.0 / math.sqrt(in_features)
    weight = jax.random.uniform(kw, (out_features, in_features), dtype,
                                minval=-bound, maxval=bound)
    bias = jax.random.uniform(kb, (out_features,), dtype,
                              minval=-bound, maxval=bound)
    return weight, bias


if __name__ == "__main__":
    key = jax.random.PRNGKey(0)
    kx, kp, kx2, kp2, kx3 = jax.random.split(key, 5)

    # MetaLinear(in_features=32, out_features=64)
    IN, OUT = 32, 64
    weight, bias = _init_meta_linear(kp, IN, OUT)

    # 1) Tiny batch: launch-latency bound -> plain-jnp fallback path.
    x_small = jax.random.normal(kx, (8, IN), jnp.float32)
    out_small = jax.block_until_ready(meta_linear_forward(x_small, weight, bias))
    ref_small = x_small @ weight.T + bias
    assert out_small.shape == (8, OUT)
    assert jnp.allclose(out_small, ref_small, atol=1e-5, rtol=1e-5)

    # 2) Batched Pallas path: leading dims folded like F.linear, ragged final
    #    row tile (1000 rows with bm=256), full Out kept VMEM-resident.
    x_big = jax.random.normal(kx2, (10, 100, IN), jnp.float32)
    out_big = jax.block_until_ready(
        meta_linear_forward(x_big, weight, bias, block_rows=256))
    ref_big = jnp.einsum("bsi,oi->bso", x_big, weight,
                         precision=lax.Precision.HIGHEST) + bias
    assert out_big.shape == (10, 100, OUT)
    assert jnp.allclose(out_big, ref_big, atol=1e-4, rtol=1e-4)

    # 3) Out-feature (N) grid axis: weight sliced per column tile (no full
    #    weight residency), multiple N tiles.
    IN2, OUT2, B3 = 128, 384, 512
    weight2, bias2 = _init_meta_linear(kp2, IN2, OUT2)
    x3 = jax.random.normal(kx3, (B3, IN2), jnp.float32)
    out3 = jax.block_until_ready(
        meta_linear_forward(x3, weight2, bias2, block_cols=128))
    ref3 = jnp.dot(x3, weight2.T, precision=lax.Precision.HIGHEST) + bias2
    assert out3.shape == (B3, OUT2)
    assert jnp.allclose(out3, ref3, atol=1e-3, rtol=1e-4)

    # TODO(synk): MetaModule's parameter bookkeeping (named_params / update_params /
    # set_param / copy) is host-side training-loop machinery with no kernel equivalent.
    print("KERNEL_OK")
</pallas_src>

<mosaic_0001>
module attributes {stable_mosaic.version = 11 : i64} {
  func.func @_linear_kernel(%arg0: i32, %arg1: i32, %arg2: memref<256x32xf32, #tpu.memory_space<vmem>>, %arg3: memref<64x32xf32, #tpu.memory_space<vmem>>, %arg4: memref<1x64xf32, #tpu.memory_space<vmem>>, %arg5: memref<256x64xf32, #tpu.memory_space<vmem>>) attributes {dimension_semantics = [#tpu.dimension_semantics<parallel>, #tpu.dimension_semantics<parallel>], iteration_bounds = array<i64: 4, 1>, scalar_prefetch = 0 : i64, scratch_operands = 0 : i64, tpu.core_type = #tpu.core_type<tc>, window_params = [{transform_indices = @transform_0, window_bounds = array<i64: 256, 32>}, {transform_indices = @transform_1, window_bounds = array<i64: 64, 32>}, {transform_indices = @transform_2, window_bounds = array<i64: 1, 64>}, {transform_indices = @transform_3, window_bounds = array<i64: 256, 64>}]} {
    %c0 = arith.constant 0 : index
    %c0_0 = arith.constant 0 : index
    %0 = vector.load %arg2[%c0, %c0_0] : memref<256x32xf32, #tpu.memory_space<vmem>>, vector<256x32xf32>
    %c0_1 = arith.constant 0 : index
    %c0_2 = arith.constant 0 : index
    %1 = vector.load %arg3[%c0_1, %c0_2] : memref<64x32xf32, #tpu.memory_space<vmem>>, vector<64x32xf32>
    %cst = arith.constant dense<0.000000e+00> : vector<256x64xf32>
    %2 = tpu.matmul %0, %1, %cst {dimension_numbers = #tpu.dot_dimension_numbers<[1], [1], [0], [0], [0, 0, 1, 0], [], []>} : vector<256x32xf32>, vector<64x32xf32>, vector<256x64xf32> -> vector<256x64xf32>
    %c0_3 = arith.constant 0 : index
    %c0_4 = arith.constant 0 : index
    %3 = vector.load %arg4[%c0_3, %c0_4] : memref<1x64xf32, #tpu.memory_space<vmem>>, vector<1x64xf32>
    %4 = vector.broadcast %3 : vector<1x64xf32> to vector<256x64xf32>
    %5 = arith.addf %2, %4 : vector<256x64xf32>
    %c0_5 = arith.constant 0 : index
    %c0_6 = arith.constant 0 : index
    %6 = vector.load %arg5[%c0_5, %c0_6] : memref<256x64xf32, #tpu.memory_space<vmem>>, vector<256x64xf32>
    tpu.vector_store %arg5[%c0_5, %c0_6], %5 {strides = array<i32>} : memref<256x64xf32, #tpu.memory_space<vmem>>, vector<256x64xf32>,
    return
  }
  func.func @transform_0(%arg0: i32, %arg1: i32) -> (i32, i32) {
    %c0_i32 = arith.constant 0 : i32
    %c0_i32_0 = arith.constant 0 : i32
    return %arg0, %c0_i32 : i32, i32
  }
  func.func @transform_1(%arg0: i32, %arg1: i32) -> (i32, i32) {
    %c0_i32 = arith.constant 0 : i32
    %c0_i32_0 = arith.constant 0 : i32
    return %arg1, %c0_i32 : i32, i32
  }
  func.func @transform_2(%arg0: i32, %arg1: i32) -> (i32, i32) {
    %c0_i32 = arith.constant 0 : i32
    %c0_i32_0 = arith.constant 0 : i32
    return %c0_i32, %arg1 : i32, i32
  }
  func.func @transform_3(%arg0: i32, %arg1: i32) -> (i32, i32) {
    %c0_i32 = arith.constant 0 : i32
    return %arg0, %arg1 : i32, i32
  }
}

</mosaic_0001>

<bundles_post_ra>
// kernel: tpu_custom_call.1
= control target key start
LH: loop header
LB: loop body
LE: loop exit
PB: predicated region body
PF: predicated region fallthrough
CT: control target
= control target key end

     0   :  { %s1480_s12 = smov 0   ;;  %s1482_s13 = smov 0   ;;  %s1907_s0 = inlined_call_operand.vmem [shape: f32[1000,32], index: 0, kind: input, shape index: {}]   ;;  %s1908_s1 = inlined_call_operand.vmem [shape: f32[64,32], index: 1, kind: input, shape index: {}]   ;;  %s1909_s2 = inlined_call_operand.vmem [shape: f32[1,64], index: 2, kind: input, shape index: {}]   ;;  %s1910_s3 = inlined_call_operand.vmem [shape: f32[1000,64], index: 3, kind: output, shape index: {}]  }
   0x1   :  { %s1484_s14 = smov 0   ;;  %s1486_s15 = smov 0  }
   0x2   :  { %s1488_s16 = smov 0  }
   0x3 LB: > { %s1045_s17 = sadd.s32 4294967295, %s1426_s16   ;;  %s25_s18 = sadd.s32 1, %s1422_s15  ;;  %s1426_s16 = sphi %s1488_s16, %s13_s16   ;;  %s1422_s15 = sphi %s1486_s15, %s1922_s15   ;;  %s1418_s14 = sphi %s1484_s14, %s1921_s14   ;;  %s1414_s13 = sphi %s1482_s13, %s1920_s13   ;;  %s1410_s12 = sphi %s1480_s12, %s1919_s12  }
   0x4   : > { %p27_p0 = scmp.ge.s32.totalorder %s25_s18, 4  ;;  %s112_s19 = sadd.s32 1, %s1414_s13 }
   0x5   : > { %p122_p1 = scmp.ne.s32.totalorder %s1414_s13, %s1410_s12  ;;  %p123_p2 = scmp.eq.s32.totalorder %s1045_s17, 3 }
   0x6   : > { %s1924_s18 = smov (%p27_p0, %s25_s18), 0  ;;  %p1051_p4 = scmp.ge.s32.totalorder %s1426_s16, 1 }
   0x7   : > { %p1512_p3 = por %p123_p2, %p122_p1  ;;  %s107_s21 = ssub.s32 %s1422_s15, %s1924_s18 }
   0x8   : > { %p179_p5 = scmp.lt.s32.totalorder %s1426_s16, 5  ;;  %p110_p6 = scmp.eq.s32.totalorder %s107_s21, 0 }
   0xa   : > { %p180_p7 = pnand %p1051_p4, %p179_p5 }
   0xb   : > { %s1521_s22 = scalar_select %p110_p6, %s1414_s13, %s112_s19  }
   0xc   : > { %183 = sbr.rel (%p180_p7) target bundleno = 348 (0x15c), region = 32  ;;  %v274_v0 = vld [vmem:[%s1908_s1] sm:$0xff] (!%p180_p7)  ;;  %v275_v1 = vld [vmem:[%s1908_s1 + $0x8] sm:$0xff] (!%p180_p7)  ;;  %vm289_vm0 = vcmask (!%p180_p7), 261120   ;;  %v276_v2 = vld [vmem:[%s1908_s1 + $0x10] sm:$0xff] (!%p180_p7)  ;;  %s1533_s29 = sshll.u32 (!%p180_p7), %s1418_s14, 5 }
   0xd   : > { %v1220_v3 = vpack.c.bf16 (!%p180_p7), %v275_v1, %v274_v0  ;;  %vm1537_vm1 = vmpackc.low (!%p180_p7), %vm289_vm0, %vm289_vm0  ;;  %v277_v5 = vld [vmem:[%s1908_s1 + $0x18] sm:$0xff] (!%p180_p7)  ;;  %p219_p8 = scmp.lt.s32.totalorder (!%p180_p7), %s1533_s29, 124  ;;  %v278_v7 = vld [vmem:[%s1908_s1 + $0x20] sm:$0xff] (!%p180_p7)  ;;  %s211_s26 = sand.u32 (!%p180_p7), 1, %s1410_s12   ;;  %vm635_vm2 = vcmask (!%p180_p7), 523264  }
   0xe   : > { %v1226_v6 = vpack.c.bf16 (!%p180_p7), %v277_v5, %v276_v2  ;;  %v279_v8 = vld [vmem:[%s1908_s1 + $0x28] sm:$0xff] (!%p180_p7)  ;;  %v280_v12 = vld [vmem:[%s1908_s1 + $0x30] sm:$0xff] (!%p180_p7)  ;;  %v281_v13 = vld [vmem:[%s1908_s1 + $0x38] sm:$0xff] (!%p180_p7)  ;;  %s1052_s27 = sshll.u32 (!%p180_p7), %s211_s26, 8 }
   0xf   : > { %1222 = vmatprep.subr.msk.bf16.mxu0 (!%p180_p7), %vm1537_vm1, %v1220_v3  ;;  %1244 = vmatprep.subr.msk.bf16.mxu1 (!%p180_p7), %vm1537_vm1, %v1220_v3  ;;  %v1232_v11 = vpack.c.bf16 (!%p180_p7), %v279_v8, %v278_v7  ;;  %v1238_v14 = vpack.c.bf16 (!%p180_p7), %v281_v13, %v280_v12  ;;  %v1663_v45 = vld [vmem:[%s1909_s2] ss:$0 sm:$0xff] (!%p180_p7)  ;;  %s1669_s12 = scalar_lea.vmem (!%p180_p7), [#allocation2], %s1052_s27  }
  0x10   : > { %1225 = vmatpush3.bf16.xpose.msk.msra.mxu0 (!%p180_p7), %vm1537_vm1, %v1220_v3  ;;  %1248 = vmatpush3.bf16.xpose.msk.msra.mxu1 (!%p180_p7), %vm1537_vm1, %v1220_v3 }
  0x11   : > { %1228 = vmatprep.subr.msk.bf16.mxu0 (!%p180_p7), %vm1537_vm1, %v1226_v6  ;;  %1245 = vmatprep.subr.msk.bf16.mxu1 (!%p180_p7), %vm1537_vm1, %v1226_v6 }
  0x13   : > { %s220_s5 = scalar_select %p219_p8, %s1533_s29, 124 }
  0x14   : > { %s676_s4 = ssub.s32 (%p1512_p3), 125, %s1533_s29 }
  0x15   : > { %s1054_s6 = sshll.u32 %s220_s5, 3  ;;  %s1113_s5 = sshll.u32 (%p1512_p3), %s1418_s14, 8 }
  0x16   : > { %s1567_s19 = scalar_lea.vmem %s1907_s0, %s1054_s6  ;;  %p677_p9 = scmp.lt.s32.totalorder (%p1512_p3), %s676_s4, 32 }
  0x17   : > { %v242_v9 = vld [vmem:[%s1567_s19] sm:$0xff]  ;;  %v243_v15 = vld [vmem:[%s1567_s19 + $0x8] sm:$0xff]  ;;  %v244_v17 = vld [vmem:[%s1567_s19 + $0x10] sm:$0xff]  ;;  %s1770_s8 = scalar_lea.vmem (%p1512_p3), %s1910_s3, %s1113_s5  }
  0x18   : > { %v258_v10 = vld [vmem:[%s1567_s19 + $0x80] sm:$0xff]  ;;  %1172 = vmatprep.mubr.msk.f32.mxu0 %vm289_vm0, %v242_v9  ;;  %1231 = vmatpush3.bf16.xpose.msk.msra.mxu0 %vm1537_vm1, %v1226_v6  ;;  %v259_v16 = vld [vmem:[%s1567_s19 + $0x88] sm:$0xff]  ;;  %v260_v18 = vld [vmem:[%s1567_s19 + $0x90] sm:$0xff] }
  0x19   : > { %1196 = vmatprep.mubr.msk.f32.mxu1 %vm289_vm0, %v258_v10  ;;  %1249 = vmatpush3.bf16.xpose.msk.msra.mxu1 %vm1537_vm1, %v1226_v6  ;;  %v245_v19 = vld [vmem:[%s1567_s19 + $0x18] sm:$0xff]  ;;  %v246_v21 = vld [vmem:[%s1567_s19 + $0x20] sm:$0xff]  ;;  %v247_v23 = vld [vmem:[%s1567_s19 + $0x28] sm:$0xff] }
  0x1a   : > { %1234 = vmatprep.subr.msk.bf16.mxu0 %vm1537_vm1, %v1232_v11  ;;  %1246 = vmatprep.subr.msk.bf16.mxu1 %vm1537_vm1, %v1232_v11  ;;  %v261_v20 = vld [vmem:[%s1567_s19 + $0x98] sm:$0xff]  ;;  %v262_v22 = vld [vmem:[%s1567_s19 + $0xa0] sm:$0xff]  ;;  %v263_v24 = vld [vmem:[%s1567_s19 + $0xa8] sm:$0xff] }
  0x1b   : > { %v248_v25 = vld [vmem:[%s1567_s19 + $0x30] sm:$0xff]  ;;  %v249_v27 = vld [vmem:[%s1567_s19 + $0x38] sm:$0xff]  ;;  %v250_v29 = vld [vmem:[%s1567_s19 + $0x40] sm:$0xff] }
  0x1c   : > { %v264_v26 = vld [vmem:[%s1567_s19 + $0xb0] sm:$0xff]  ;;  %v265_v28 = vld [vmem:[%s1567_s19 + $0xb8] sm:$0xff]  ;;  %v266_v30 = vld [vmem:[%s1567_s19 + $0xc0] sm:$0xff] }
  0x1d   : > { %v251_v31 = vld [vmem:[%s1567_s19 + $0x48] sm:$0xff]  ;;  %v252_v33 = vld [vmem:[%s1567_s19 + $0x50] sm:$0xff]  ;;  %v253_v35 = vld [vmem:[%s1567_s19 + $0x58] sm:$0xff] }
  0x1e   : > { %v267_v32 = vld [vmem:[%s1567_s19 + $0xc8] sm:$0xff]  ;;  %v268_v34 = vld [vmem:[%s1567_s19 + $0xd0] sm:$0xff]  ;;  %v269_v36 = vld [vmem:[%s1567_s19 + $0xd8] sm:$0xff] }
  0x1f   : > { %v254_v37 = vld [vmem:[%s1567_s19 + $0x60] sm:$0xff]  ;;  %v255_v39 = vld [vmem:[%s1567_s19 + $0x68] sm:$0xff]  ;;  %v256_v41 = vld [vmem:[%s1567_s19 + $0x70] sm:$0xff] }
  0x20   : > { %1237 = vmatpush3.bf16.xpose.msk.msra.mxu0 %vm1537_vm1, %v1232_v11  ;;  %v270_v38 = vld [vmem:[%s1567_s19 + $0xe0] sm:$0xff]  ;;  %v271_v40 = vld [vmem:[%s1567_s19 + $0xe8] sm:$0xff]  ;;  %v272_v42 = vld [vmem:[%s1567_s19 + $0xf0] sm:$0xff] }
  0x21   : > { %1250 = vmatpush3.bf16.xpose.msk.msra.mxu1 %vm1537_vm1, %v1232_v11  ;;  %1240 = vmatprep.subr.msk.bf16.mxu0 %vm1537_vm1, %v1238_v14  ;;  %v257_v43 = vld [vmem:[%s1567_s19 + $0x78] sm:$0xff] }
  0x22   : > { %1247 = vmatprep.subr.msk.bf16.mxu1 %vm1537_vm1, %v1238_v14  ;;  %v273_v44 = vld [vmem:[%s1567_s19 + $0xf8] sm:$0xff] }
  0x28   : > { %1243 = vmatpush3.bf16.xpose.msk.msra.mxu0 %vm1537_vm1, %v1238_v14 }
  0x29   : > { %1251 = vmatpush3.bf16.xpose.msk.msra.mxu1 %vm1537_vm1, %v1238_v14 }
  0x2f   : > { %1173 = vmatmul.mubr.msk.f32.vlgmr.msra.gmra.mrb[0].mxu0 %vm289_vm0, %v243_v15 }
  0x30   : > { %1197 = vmatmul.mubr.msk.f32.vlgmr.msra.gmra.mrb[0].mxu1 %vm289_vm0, %v259_v16  ;;  %1175 = vmatprep.mubr.msk.f32.mxu0 %vm289_vm0, %v244_v17 }
  0x31   : > { %1199 = vmatprep.mubr.msk.f32.mxu1 %vm289_vm0, %v260_v18 }
  0x33   : > { %1176 = vmatmul.mubr.msk.f32.gmra.mrb[2].mxu0 %vm289_vm0, %v245_v19 }
  0x34   : > { %1200 = vmatmul.mubr.msk.f32.gmra.mrb[2].mxu1 %vm289_vm0, %v261_v20  ;;  %1178 = vmatprep.mubr.msk.f32.mxu0 %vm289_vm0, %v246_v21 }
  0x35   : > { %1202 = vmatprep.mubr.msk.f32.mxu1 %vm289_vm0, %v262_v22 }
  0x37   : > { %1179 = vmatmul.mubr.msk.f32.gmra.mrb[4].mxu0 %vm289_vm0, %v247_v23 }
  0x38   : > { %1203 = vmatmul.mubr.msk.f32.gmra.mrb[4].mxu1 %vm289_vm0, %v263_v24  ;;  %1181 = vmatprep.mubr.msk.f32.mxu0 %vm289_vm0, %v248_v25 }
  0x39   : > { %1205 = vmatprep.mubr.msk.f32.mxu1 %vm289_vm0, %v264_v26 }
  0x3b   : > { %1182 = vmatmul.mubr.msk.f32.gmra.mrb[6].mxu0 %vm289_vm0, %v249_v27 }
  0x3c   : > { %1206 = vmatmul.mubr.msk.f32.gmra.mrb[6].mxu1 %vm289_vm0, %v265_v28  ;;  %1184 = vmatprep.mubr.msk.f32.mxu0 %vm289_vm0, %v250_v29 }
  0x3d   : > { %1208 = vmatprep.mubr.msk.f32.mxu1 %vm289_vm0, %v266_v30 }
  0x3f   : > { %1185 = vmatmul.mubr.msk.f32.gmra.mrb[8].mxu0 %vm289_vm0, %v251_v31 }
  0x40   : > { %1209 = vmatmul.mubr.msk.f32.gmra.mrb[8].mxu1 %vm289_vm0, %v267_v32  ;;  %1187 = vmatprep.mubr.msk.f32.mxu0 %vm289_vm0, %v252_v33 }
  0x41   : > { %1211 = vmatprep.mubr.msk.f32.mxu1 %vm289_vm0, %v268_v34 }
  0x43   : > { %1188 = vmatmul.mubr.msk.f32.gmra.mrb[10].mxu0 %vm289_vm0, %v253_v35 }
  0x44   : > { %1212 = vmatmul.mubr.msk.f32.gmra.mrb[10].mxu1 %vm289_vm0, %v269_v36  ;;  %1190 = vmatprep.mubr.msk.f32.mxu0 %vm289_vm0, %v254_v37 }
  0x45   : > { %1214 = vmatprep.mubr.msk.f32.mxu1 %vm289_vm0, %v270_v38 }
  0x47   : > { %1191 = vmatmul.mubr.msk.f32.gmra.mrb[12].mxu0 %vm289_vm0, %v255_v39 }
  0x48   : > { %1215 = vmatmul.mubr.msk.f32.gmra.mrb[12].mxu1 %vm289_vm0, %v271_v40  ;;  %1193 = vmatprep.mubr.msk.f32.mxu0 %vm289_vm0, %v256_v41 }
  0x49   : > { %1217 = vmatprep.mubr.msk.f32.mxu1 %vm289_vm0, %v272_v42 }
  0x4b   : > { %1194 = vmatmul.mubr.msk.f32.gmra.mrb[14].mxu0 %vm289_vm0, %v257_v43 }
  0x4c   : > { %1218 = vmatmul.mubr.msk.f32.gmra.mrb[14].mxu1 %vm289_vm0, %v273_v44 }
 0x102   : > { %v1174_v46 = vpop.f32.mrb[0].mxu0 }
 0x103   : > { %v1198_v47 = vpop.f32.mrb[0].mxu1  ;;  %v482_v48 = vadd.f32 %v1174_v46, %v1663_v45  ;;  %v476_v50 = vpop.f32.mrb[1].mxu0 }
 0x104   : > { %v562_v49 = vadd.f32 %v1198_v47, %v1663_v45  ;;  %v556_v51 = vpop.f32.mrb[1].mxu1  ;;  %v477_v52 = vadd.f32 %v1663_v45, %v476_v50 }
 0x105   : > { %v557_v53 = vadd.f32 %v1663_v45, %v556_v51  ;;  %637 = vst.msk [vmem:[%s1669_s12 + $0x8] sm:$0xff] %vm635_vm2, %v482_v48 }
 0x106   : > { %653 = vst.msk [vmem:[%s1669_s12 + $0x88] sm:$0xff] %vm635_vm2, %v562_v49  ;;  %636 = vst.msk [vmem:[%s1669_s12] sm:$0xff] %vm635_vm2, %v477_v52  ;;  %v1177_v54 = vpop.f32.mrb[2].mxu0 }
 0x107   : > { %652 = vst.msk [vmem:[%s1669_s12 + $0x80] sm:$0xff] %vm635_vm2, %v557_v53  ;;  %v1201_v55 = vpop.f32.mrb[2].mxu1  ;;  %v492_v56 = vadd.f32 %v1177_v54, %v1663_v45  ;;  %v486_v58 = vpop.f32.mrb[3].mxu0 }
 0x108   : > { %v572_v57 = vadd.f32 %v1201_v55, %v1663_v45  ;;  %v566_v59 = vpop.f32.mrb[3].mxu1  ;;  %v487_v60 = vadd.f32 %v1663_v45, %v486_v58 }
 0x109   : > { %v567_v61 = vadd.f32 %v1663_v45, %v566_v59  ;;  %639 = vst.msk [vmem:[%s1669_s12 + $0x18] sm:$0xff] %vm635_vm2, %v492_v56 }
 0x10a   : > { %655 = vst.msk [vmem:[%s1669_s12 + $0x98] sm:$0xff] %vm635_vm2, %v572_v57  ;;  %638 = vst.msk [vmem:[%s1669_s12 + $0x10] sm:$0xff] %vm635_vm2, %v487_v60  ;;  %v1180_v62 = vpop.f32.mrb[4].mxu0 }
 0x10b   : > { %654 = vst.msk [vmem:[%s1669_s12 + $0x90] sm:$0xff] %vm635_vm2, %v567_v61  ;;  %v1204_v63 = vpop.f32.mrb[4].mxu1  ;;  %v502_v0 = vadd.f32 %v1180_v62, %v1663_v45  ;;  %v496_v2 = vpop.f32.mrb[5].mxu0 }
 0x10c   : > { %v582_v1 = vadd.f32 %v1204_v63, %v1663_v45  ;;  %v576_v3 = vpop.f32.mrb[5].mxu1  ;;  %v497_v4 = vadd.f32 %v1663_v45, %v496_v2 }
 0x10d   : > { %v577_v5 = vadd.f32 %v1663_v45, %v576_v3  ;;  %641 = vst.msk [vmem:[%s1669_s12 + $0x28] sm:$0xff] %vm635_vm2, %v502_v0 }
 0x10e   : > { %657 = vst.msk [vmem:[%s1669_s12 + $0xa8] sm:$0xff] %vm635_vm2, %v582_v1  ;;  %640 = vst.msk [vmem:[%s1669_s12 + $0x20] sm:$0xff] %vm635_vm2, %v497_v4  ;;  %v1183_v6 = vpop.f32.mrb[6].mxu0 }
 0x10f   : > { %656 = vst.msk [vmem:[%s1669_s12 + $0xa0] sm:$0xff] %vm635_vm2, %v577_v5  ;;  %v1207_v7 = vpop.f32.mrb[6].mxu1  ;;  %v512_v8 = vadd.f32 %v1183_v6, %v1663_v45  ;;  %v506_v10 = vpop.f32.mrb[7].mxu0 }
 0x110   : > { %v592_v9 = vadd.f32 %v1207_v7, %v1663_v45  ;;  %v586_v11 = vpop.f32.mrb[7].mxu1  ;;  %v507_v12 = vadd.f32 %v1663_v45, %v506_v10 }
 0x111   : > { %v587_v13 = vadd.f32 %v1663_v45, %v586_v11  ;;  %643 = vst.msk [vmem:[%s1669_s12 + $0x38] sm:$0xff] %vm635_vm2, %v512_v8 }
 0x112   : > { %659 = vst.msk [vmem:[%s1669_s12 + $0xb8] sm:$0xff] %vm635_vm2, %v592_v9  ;;  %642 = vst.msk [vmem:[%s1669_s12 + $0x30] sm:$0xff] %vm635_vm2, %v507_v12  ;;  %v1186_v14 = vpop.f32.mrb[8].mxu0 }
 0x113   : > { %658 = vst.msk [vmem:[%s1669_s12 + $0xb0] sm:$0xff] %vm635_vm2, %v587_v13  ;;  %v1210_v15 = vpop.f32.mrb[8].mxu1  ;;  %v522_v16 = vadd.f32 %v1186_v14, %v1663_v45  ;;  %v516_v18 = vpop.f32.mrb[9].mxu0 }
 0x114   : > { %v602_v17 = vadd.f32 %v1210_v15, %v1663_v45  ;;  %v596_v19 = vpop.f32.mrb[9].mxu1  ;;  %v517_v20 = vadd.f32 %v1663_v45, %v516_v18 }
 0x115   : > { %v597_v21 = vadd.f32 %v1663_v45, %v596_v19  ;;  %645 = vst.msk [vmem:[%s1669_s12 + $0x48] sm:$0xff] %vm635_vm2, %v522_v16 }
 0x116   : > { %661 = vst.msk [vmem:[%s1669_s12 + $0xc8] sm:$0xff] %vm635_vm2, %v602_v17  ;;  %644 = vst.msk [vmem:[%s1669_s12 + $0x40] sm:$0xff] %vm635_vm2, %v517_v20  ;;  %v1189_v22 = vpop.f32.mrb[10].mxu0 }
 0x117   : > { %660 = vst.msk [vmem:[%s1669_s12 + $0xc0] sm:$0xff] %vm635_vm2, %v597_v21  ;;  %v1213_v23 = vpop.f32.mrb[10].mxu1  ;;  %v532_v24 = vadd.f32 %v1189_v22, %v1663_v45  ;;  %v526_v26 = vpop.f32.mrb[11].mxu0 }
 0x118   : > { %v612_v25 = vadd.f32 %v1213_v23, %v1663_v45  ;;  %v606_v27 = vpop.f32.mrb[11].mxu1  ;;  %v527_v28 = vadd.f32 %v1663_v45, %v526_v26 }
 0x119   : > { %v607_v29 = vadd.f32 %v1663_v45, %v606_v27  ;;  %647 = vst.msk [vmem:[%s1669_s12 + $0x58] sm:$0xff] %vm635_vm2, %v532_v24 }
 0x11a   : > { %663 = vst.msk [vmem:[%s1669_s12 + $0xd8] sm:$0xff] %vm635_vm2, %v612_v25  ;;  %646 = vst.msk [vmem:[%s1669_s12 + $0x50] sm:$0xff] %vm635_vm2, %v527_v28  ;;  %v1192_v30 = vpop.f32.mrb[12].mxu0 }
 0x11b   : > { %662 = vst.msk [vmem:[%s1669_s12 + $0xd0] sm:$0xff] %vm635_vm2, %v607_v29  ;;  %v1216_v31 = vpop.f32.mrb[12].mxu1  ;;  %v542_v32 = vadd.f32 %v1192_v30, %v1663_v45  ;;  %v536_v34 = vpop.f32.mrb[13].mxu0 }
 0x11c   : > { %v622_v33 = vadd.f32 %v1216_v31, %v1663_v45  ;;  %v616_v35 = vpop.f32.mrb[13].mxu1  ;;  %v537_v36 = vadd.f32 %v1663_v45, %v536_v34 }
 0x11d   : > { %v617_v37 = vadd.f32 %v1663_v45, %v616_v35  ;;  %649 = vst.msk [vmem:[%s1669_s12 + $0x68] sm:$0xff] %vm635_vm2, %v542_v32  ;;  %674 = sbr.rel (!%p1512_p3) target bundleno = 348 (0x15c), region = 36 }
 0x11e   : > { %665 = vst.msk [vmem:[%s1669_s12 + $0xe8] sm:$0xff] %vm635_vm2, %v622_v33  ;;  %648 = vst.msk [vmem:[%s1669_s12 + $0x60] sm:$0xff] %vm635_vm2, %v537_v36  ;;  %v1195_v38 = vpop.f32.mrb[14].mxu0 }
 0x11f   : > { %664 = vst.msk [vmem:[%s1669_s12 + $0xe0] sm:$0xff] %vm635_vm2, %v617_v37  ;;  %v1219_v39 = vpop.f32.mrb[14].mxu1  ;;  %v552_v40 = vadd.f32 %v1195_v38, %v1663_v45  ;;  %v546_v42 = vpop.f32.mrb[15].mxu0 }
 0x120   : > { %v632_v41 = vadd.f32 %v1219_v39, %v1663_v45  ;;  %v626_v43 = vpop.f32.mrb[15].mxu1  ;;  %v547_v44 = vadd.f32 %v1663_v45, %v546_v42 }
 0x121   : > { %v627_v46 = vadd.f32 %v1663_v45, %v626_v43  ;;  %651 = vst.msk [vmem:[%s1669_s12 + $0x78] sm:$0xff] %vm635_vm2, %v552_v40 }
 0x122   : > { %667 = vst.msk [vmem:[%s1669_s12 + $0xf8] sm:$0xff] %vm635_vm2, %v632_v41  ;;  %650 = vst.msk [vmem:[%s1669_s12 + $0x70] sm:$0xff] %vm635_vm2, %v547_v44 }
 0x123   : > { %666 = vst.msk [vmem:[%s1669_s12 + $0xf0] sm:$0xff] %vm635_vm2, %v627_v46 }
 0x124   : > { %s1926_s4 = smov (!%p677_p9, %s676_s4), 32 }
 0x125   : > { %s1098_s9 = sshll.u32 %s1926_s4, 7 }
 0x126   : > { %p1101_p10 = scmp.eq.s32.totalorder %s1098_s9, 0 }
 0x127   : > { %s1776_s10 = sshrl.u32 (!%p1101_p10), %s1926_s4, 5 }
 0x128   : > { %686 = sbr.rel (%p1101_p10) target bundleno = 348 (0x15c), region = 40  ;;  %p1102_p11 = scmp.le.s32.totalorder (!%p1101_p10), %s1776_s10, 0 }
 0x12f   : > { %975 = sbr.rel (%p1102_p11) target bundleno = 327 (0x147), region = 122  ;;  %s1914_s14 = smov (!%p1102_p11), %s1770_s8 }
 0x130   : > { %s1915_s20 = smov (!%p1102_p11), %s1669_s12  ;;  %s1785_s29 = smov (!%p1102_p11), 0  }
 0x131   : > { %s1787_s11 = smov (!%p1102_p11), 0  }
 0x136 LB: >> { %v810_v45 = vld [vmem:[%s1434_s20] sm:$0xff]  ;;  %v812_v47 = vld [vmem:[%s1434_s20 + $0x8] sm:$0xff]  ;;  %v814_v48 = vld [vmem:[%s1434_s20 + $0x10] sm:$0xff]  ;;  %s874_s17 = sadd.s32 1, %s1438_s29  ;;  %s804_s11 = sadd.s32 1, %s1442_s11   ;;  %s1442_s11 = sphi %s1787_s11, %s804_s11   ;;  %s1438_s29 = sphi %s1785_s29, %s1918_s29   ;;  %s1434_s20 = sphi %s1915_s20, %s1917_s20   ;;  %s1430_s14 = sphi %s1914_s14, %s1916_s14  }
 0x137   : >> { %811 = vst [vmem:[%s1430_s14] sm:$0xff] %v810_v45  ;;  %813 = vst [vmem:[%s1430_s14 + $0x8] sm:$0xff] %v812_v47  ;;  %v816_v49 = vld [vmem:[%s1434_s20 + $0x18] sm:$0xff]  ;;  %v818_v50 = vld [vmem:[%s1434_s20 + $0x20] sm:$0xff]  ;;  %p875_p12 = scmp.ge.s32.totalorder %s874_s17, %s1776_s10  ;;  %p803_p13 = scmp.ge.s32.totalorder %s804_s11, %s1776_s10 }
 0x138   : >> { %815 = vst [vmem:[%s1430_s14 + $0x10] sm:$0xff] %v814_v48  ;;  %v820_v51 = vld [vmem:[%s1434_s20 + $0x28] sm:$0xff]  ;;  %817 = vst [vmem:[%s1430_s14 + $0x18] sm:$0xff] %v816_v49  ;;  %v822_v52 = vld [vmem:[%s1434_s20 + $0x30] sm:$0xff] }
 0x139   : >> { %819 = vst [vmem:[%s1430_s14 + $0x20] sm:$0xff] %v818_v50  ;;  %821 = vst [vmem:[%s1430_s14 + $0x28] sm:$0xff] %v820_v51  ;;  %v824_v53 = vld [vmem:[%s1434_s20 + $0x38] sm:$0xff]  ;;  %v826_v54 = vld [vmem:[%s1434_s20 + $0x40] sm:$0xff]  ;;  %s1928_s17 = smov (%p875_p12, %s874_s17), 0 }
 0x13a   : >> { %823 = vst [vmem:[%s1430_s14 + $0x30] sm:$0xff] %v822_v52  ;;  %825 = vst [vmem:[%s1430_s14 + $0x38] sm:$0xff] %v824_v53  ;;  %v828_v55 = vld [vmem:[%s1434_s20 + $0x48] sm:$0xff]  ;;  %v830_v56 = vld [vmem:[%s1434_s20 + $0x50] sm:$0xff]  ;;  %s1103_s19 = sshll.u32 %s1928_s17, 8  ;;  %s1918_s29 = smov %s1928_s17 }
 0x13b   : >> { %827 = vst [vmem:[%s1430_s14 + $0x40] sm:$0xff] %v826_v54  ;;  %v832_v57 = vld [vmem:[%s1434_s20 + $0x58] sm:$0xff]  ;;  %829 = vst [vmem:[%s1430_s14 + $0x48] sm:$0xff] %v828_v55  ;;  %v834_v58 = vld [vmem:[%s1434_s20 + $0x60] sm:$0xff]  ;;  %s1843_s21 = scalar_lea.vmem %s1669_s12, %s1103_s19 [#allocation2]   ;;  %s880_s23 = scalar_lea.vmem %s1770_s8, %s1103_s19  }
 0x13c   : >> { %831 = vst [vmem:[%s1430_s14 + $0x50] sm:$0xff] %v830_v56  ;;  %833 = vst [vmem:[%s1430_s14 + $0x58] sm:$0xff] %v832_v57  ;;  %v836_v59 = vld [vmem:[%s1434_s20 + $0x68] sm:$0xff]  ;;  %v838_v60 = vld [vmem:[%s1434_s20 + $0x70] sm:$0xff] }
 0x13d   : >> { %835 = vst [vmem:[%s1430_s14 + $0x60] sm:$0xff] %v834_v58  ;;  %837 = vst [vmem:[%s1430_s14 + $0x68] sm:$0xff] %v836_v59  ;;  %v840_v61 = vld [vmem:[%s1434_s20 + $0x78] sm:$0xff]  ;;  %v842_v62 = vld [vmem:[%s1434_s20 + $0x80] sm:$0xff] }
 0x13e   : >> { %839 = vst [vmem:[%s1430_s14 + $0x70] sm:$0xff] %v838_v60  ;;  %v844_v63 = vld [vmem:[%s1434_s20 + $0x88] sm:$0xff]  ;;  %841 = vst [vmem:[%s1430_s14 + $0x78] sm:$0xff] %v840_v61  ;;  %v846_v0 = vld [vmem:[%s1434_s20 + $0x90] sm:$0xff] }
 0x13f   : >> { %843 = vst [vmem:[%s1430_s14 + $0x80] sm:$0xff] %v842_v62  ;;  %845 = vst [vmem:[%s1430_s14 + $0x88] sm:$0xff] %v844_v63  ;;  %v848_v1 = vld [vmem:[%s1434_s20 + $0x98] sm:$0xff]  ;;  %v850_v2 = vld [vmem:[%s1434_s20 + $0xa0] sm:$0xff] }
 0x140   : >> { %847 = vst [vmem:[%s1430_s14 + $0x90] sm:$0xff] %v846_v0  ;;  %849 = vst [vmem:[%s1430_s14 + $0x98] sm:$0xff] %v848_v1  ;;  %v852_v3 = vld [vmem:[%s1434_s20 + $0xa8] sm:$0xff]  ;;  %v854_v4 = vld [vmem:[%s1434_s20 + $0xb0] sm:$0xff]  ;;  %806 = sbr.rel (!%p803_p13) target bundleno = 310 (0x136), region = 128 }
 0x141   : >> { %851 = vst [vmem:[%s1430_s14 + $0xa0] sm:$0xff] %v850_v2  ;;  %v856_v5 = vld [vmem:[%s1434_s20 + $0xb8] sm:$0xff]  ;;  %853 = vst [vmem:[%s1430_s14 + $0xa8] sm:$0xff] %v852_v3  ;;  %v858_v6 = vld [vmem:[%s1434_s20 + $0xc0] sm:$0xff] }
 0x142   : >> { %855 = vst [vmem:[%s1430_s14 + $0xb0] sm:$0xff] %v854_v4  ;;  %857 = vst [vmem:[%s1430_s14 + $0xb8] sm:$0xff] %v856_v5  ;;  %v860_v7 = vld [vmem:[%s1434_s20 + $0xc8] sm:$0xff]  ;;  %v862_v8 = vld [vmem:[%s1434_s20 + $0xd0] sm:$0xff] }
 0x143   : >> { %859 = vst [vmem:[%s1430_s14 + $0xc0] sm:$0xff] %v858_v6  ;;  %861 = vst [vmem:[%s1430_s14 + $0xc8] sm:$0xff] %v860_v7  ;;  %v864_v9 = vld [vmem:[%s1434_s20 + $0xd8] sm:$0xff]  ;;  %v866_v10 = vld [vmem:[%s1434_s20 + $0xe0] sm:$0xff] }
 0x144   : >> { %863 = vst [vmem:[%s1430_s14 + $0xd0] sm:$0xff] %v862_v8  ;;  %v868_v11 = vld [vmem:[%s1434_s20 + $0xe8] sm:$0xff]  ;;  %865 = vst [vmem:[%s1430_s14 + $0xd8] sm:$0xff] %v864_v9  ;;  %v870_v12 = vld [vmem:[%s1434_s20 + $0xf0] sm:$0xff] }
 0x145   : >> { %867 = vst [vmem:[%s1430_s14 + $0xe0] sm:$0xff] %v866_v10  ;;  %869 = vst [vmem:[%s1430_s14 + $0xe8] sm:$0xff] %v868_v11  ;;  %v872_v13 = vld [vmem:[%s1434_s20 + $0xf8] sm:$0xff]  ;;  %s1917_s20 = smov %s1843_s21 }
 0x146   : >> { %871 = vst [vmem:[%s1430_s14 + $0xf0] sm:$0xff] %v870_v12  ;;  %873 = vst [vmem:[%s1430_s14 + $0xf8] sm:$0xff] %v872_v13  ;;  %s1916_s14 = smov %s880_s23 }
 0x147 PF: > { %s1884_s24 = sand.u32 31, %s1926_s4   ;;  %s1114_s25 = sshll.u32 %s1776_s10, 8 }
 0x148   : > { %s885_s26 = scalar_lea.vmem %s1669_s12, %s1114_s25 [#allocation2]   ;;  %s887_s27 = scalar_lea.vmem %s1770_s8, %s1114_s25  }
 0x149   : > { %p1108_p0 = scmp.le.s32.totalorder %s1884_s24, 0 }
 0x14a   : > { %s1444_s28 = smov (!%p1108_p0), %s887_s27   ;;  %s1448_s30 = smov (!%p1108_p0), %s885_s26  }
 0x14b   : > { %989 = sbr.rel (%p1108_p0) target bundleno = 348 (0x15c), region = 133  ;;  %s1452_s5 = smov (!%p1108_p0), 0  }
 0x14c   : > { %s1456_s6 = smov (!%p1108_p0), 0  }
 0x152 LB: >> { %v897_v14 = vld [vmem:[%s1450_s30] sm:$0xff]  ;;  %s899_s4 = sadd.s32 1, %s1454_s5  ;;  %s891_s6 = sadd.s32 1, %s1458_s6   ;;  %s1458_s6 = sphi %s1456_s6, %s891_s6   ;;  %s1454_s5 = sphi %s1452_s5, %s1453_s5   ;;  %s1450_s30 = sphi %s1448_s30, %s904_s30   ;;  %s1446_s28 = sphi %s1444_s28, %s905_s28  }
 0x153   : >> { %898 = vst [vmem:[%s1446_s28] sm:$0xff] %v897_v14  ;;  %p900_p1 = scmp.ge.s32.totalorder %s899_s4, %s1884_s24  ;;  %p890_p2 = scmp.ge.s32.totalorder %s891_s6, %s1884_s24 }
 0x155   : >> { %s1930_s4 = smov (%p900_p1, %s899_s4), 0  ;;  %893 = sbr.rel (!%p890_p2) target bundleno = 338 (0x152), region = 139 }
 0x156   : >> { %s1109_s12 = sshll.u32 %s1930_s4, 3  ;;  %s1453_s5 = smov %s1930_s4  }
 0x157   : >> { %s904_s30 = scalar_lea.vmem %s885_s26, %s1109_s12 [#allocation2]   ;;  %s905_s28 = scalar_lea.vmem %s887_s27, %s1109_s12  }
 0x15c PF: > { %s13_s16 = sadd.s32 1, %s1426_s16   ;;  %s1919_s12 = smov %s1414_s13 }
 0x15d   : > { %p10_p3 = scmp.ge.s32.totalorder %s13_s16, 6   ;;  %s1920_s13 = smov %s1521_s22 }
 0x15e   : > { %s1921_s14 = smov %s1422_s15  ;;  %s1922_s15 = smov %s1924_s18 }
 0x15f   :  { %12 = sbr.rel (!%p10_p3) target bundleno = 3 (0x3), region = 150 }

</bundles_post_ra>
